<compile_context>
chip_gen: v7x
topology: tpu7x:2x2x1
jax: 0.10.0
libtpu: 0.0.40
codegen_flags: <defaults>
</compile_context>

<pallas_src>
import functools

import jax
import jax.numpy as jnp
from jax import lax
from jax.experimental import pallas as pl
from jax.experimental.pallas import tpu as pltpu


def _round_up(n, m):
    return ((n + m - 1) // m) * m


# ----------------------------------------------------------------------------
# Pallas kernel: one batch element per grid step.
# Activations are (C, H*W): channels on sublanes, flattened spatial on lanes.
# ----------------------------------------------------------------------------
def _resblock_kernel(x_ref, w1_ref, w2_ref, p_ref, out_ref, patches_ref,
                     *, H, W, Cin, K_pad):
    L = H * W

    # Source-column keep masks for the dx = -1 / +1 taps (row halo falls out of
    # the zero-fill of the lane shift).  Built once per grid step, (1, L) bool.
    col = lax.broadcasted_iota(jnp.int32, (1, L), 1) % W
    keep_dxm1 = col <= (W - 2)   # dx = -1: source col W-1 feeds a wrapped dest -> zero it
    keep_dxp1 = col >= 1         # dx = +1: source col 0   feeds a wrapped dest -> zero it

    # Zero the K-padding rows of the patch scratch (their weight columns are
    # zero, but stale VMEM could hold NaNs).
    if K_pad > 9 * Cin:
        patches_ref[9 * Cin:, :] = jnp.zeros((K_pad - 9 * Cin, L), jnp.bfloat16)

    # Input arrives bf16 from HBM; promote once to f32 for masking / residual
    # (v5e-safe elementwise math).
    x = x_ref[0].astype(jnp.float32)                      # (Cin, L)

    def conv3x3(img, w_ref):
        """img: (Cin, L) f32, w_ref: (Co, K_pad) bf16 -> (Co, L) f32 via ONE GEMM."""
        # Hoisted column-masked sources (f32 select, then cast-on-store).
        src_by_dx = {
            -1: jnp.where(keep_dxm1, img, 0.0),
            0: img,
            1: jnp.where(keep_dxp1, img, 0.0),
        }
        t = 0
        for dy in (-1, 0, 1):
            for dx in (-1, 0, 1):
                d = dy * W + dx                           # static flat offset
                src = src_by_dx[dx]
                if d == 0:
                    tap = src
                elif d > 0:
                    # tap[l] = src[l + d] for l < L-d, else 0  (zero fill = row halo)
                    tap = jnp.concatenate(
                        [src[:, d:], jnp.zeros((Cin, d), jnp.float32)], axis=1)
                else:
                    tap = jnp.concatenate(
                        [jnp.zeros((Cin, -d), jnp.float32), src[:, :L + d]], axis=1)
                # Full-width, lane-aligned bf16 store of one tap row-block.
                patches_ref[t * Cin:(t + 1) * Cin, :] = tap.astype(jnp.bfloat16)
                t += 1
        # Single K = 9*Ci contraction on the MXU, f32 accumulation.
        return jnp.dot(w_ref[...], patches_ref[...],
                       preferred_element_type=jnp.float32)

    # conv1 -> bn1 -> relu   (BN/ReLU/residual in f32)
    mid = conv3x3(x, w1_ref)
    mid = jnp.maximum(mid * p_ref[:, 0:1] + p_ref[:, 1:2], 0.0)

    # conv2 -> bn2 -> +identity -> relu
    y = conv3x3(mid, w2_ref)
    y = y * p_ref[:, 2:3] + p_ref[:, 3:4] + x
    out_ref[0] = jnp.maximum(y, 0.0)


# ----------------------------------------------------------------------------
# Wrapper: NCHW in / NCHW out (PyTorch convention); only contiguous reshapes.
# ----------------------------------------------------------------------------
def resblock_pallas(x_nchw, w1_oihw, w2_oihw, bn1_params, bn2_params, eps=1e-5):
    B, Cin, H, W = x_nchw.shape
    Co = w1_oihw.shape[0]
    assert Cin == Co, "residual add requires in_channels == out_channels (stride 1)"
    L = H * W
    K = 9 * Cin
    K_pad = _round_up(K, 16)          # bf16 sublane alignment for the patch scratch

    # Fold BN (inference mode) into per-channel scale/bias; pack as one (Co, 4) array.
    g1, beta1, m1, v1 = bn1_params
    g2, beta2, m2, v2 = bn2_params
    s1 = g1 / jnp.sqrt(v1 + eps)
    s2 = g2 / jnp.sqrt(v2 + eps)
    params = jnp.stack([s1, beta1 - m1 * s1, s2, beta2 - m2 * s2],
                       axis=1).astype(jnp.float32)                       # (Co, 4)

    # Conv weights: OIHW -> (Co, ky, kx, Ci) -> (Co, 9*Ci) [zero-padded to K_pad], bf16.
    def pack_w(w):
        w = jnp.transpose(w, (0, 2, 3, 1)).reshape(Co, K)
        if K_pad > K:
            w = jnp.pad(w, ((0, 0), (0, K_pad - K)))
        return w.astype(jnp.bfloat16)

    w1 = pack_w(w1_oihw)
    w2 = pack_w(w2_oihw)

    # NCHW with spatial flattened; activations carried bf16 in HBM (one cast).
    x_flat = x_nchw.reshape(B, Cin, L).astype(jnp.bfloat16)

    kernel = functools.partial(_resblock_kernel, H=H, W=W, Cin=Cin, K_pad=K_pad)
    out_flat = pl.pallas_call(
        kernel,
        out_shape=jax.ShapeDtypeStruct((B, Co, L), jnp.float32),
        grid=(B,),
        in_specs=[
            pl.BlockSpec((1, Cin, L), lambda b: (b, 0, 0)),   # x (also the identity)
            pl.BlockSpec((Co, K_pad), lambda b: (0, 0)),      # w1 (bf16, flattened)
            pl.BlockSpec((Co, K_pad), lambda b: (0, 0)),      # w2 (bf16, flattened)
            pl.BlockSpec((Co, 4), lambda b: (0, 0)),          # packed BN scale/bias
        ],
        out_specs=pl.BlockSpec((1, Co, L), lambda b: (b, 0, 0)),
        scratch_shapes=[pltpu.VMEM((K_pad, L), jnp.bfloat16)],   # im2col patch matrix
        compiler_params=pltpu.CompilerParams(
            dimension_semantics=("parallel",),
            vmem_limit_bytes=32 * 1024 * 1024),
    )(x_flat, w1, w2, params)

    return out_flat.reshape(B, Co, H, W)


# ----------------------------------------------------------------------------
# Pure-JAX reference: same inference-mode BN and the same bf16-operand /
# f32-accumulate conv policy as the kernel.
# ----------------------------------------------------------------------------
def resblock_ref(x_nchw, w1, w2, bn1_params, bn2_params, eps=1e-5,
                 conv_dtype=jnp.bfloat16):
    def bn(o, params):
        g, b, m, v = params
        sh = (1, -1, 1, 1)
        return (o - m.reshape(sh)) / jnp.sqrt(v.reshape(sh) + eps) * g.reshape(sh) + b.reshape(sh)

    dn = ('NCHW', 'OIHW', 'NCHW')

    def conv(inp, w):
        return lax.conv_general_dilated(
            inp.astype(conv_dtype), w.astype(conv_dtype), (1, 1),
            ((1, 1), (1, 1)), dimension_numbers=dn,
            preferred_element_type=jnp.float32)

    out = jnp.maximum(bn(conv(x_nchw, w1), bn1_params), 0.0)
    out = bn(conv(out, w2), bn2_params) + x_nchw
    return jnp.maximum(out, 0.0)


if __name__ == "__main__":
    B, C, H, W = 2, 16, 16, 16   # small shapes; in_channels == out_channels

    key = jax.random.PRNGKey(0)
    keys = jax.random.split(key, 11)

    x = jax.random.normal(keys[0], (B, C, H, W), jnp.float32)
    # The kernel carries activations in bf16 through HBM; quantize the test
    # input once so the f32 reference sees the identical values.
    x = x.astype(jnp.bfloat16).astype(jnp.float32)

    # Conv weights in PyTorch OIHW layout, bias=False.
    w1 = 0.1 * jax.random.normal(keys[1], (C, C, 3, 3), jnp.float32)
    w2 = 0.1 * jax.random.normal(keys[2], (C, C, 3, 3), jnp.float32)

    # BN params/buffers: (gamma, beta, running_mean, running_var).
    bn1 = (jax.random.uniform(keys[3], (C,), jnp.float32, 0.5, 1.5),
           0.1 * jax.random.normal(keys[4], (C,), jnp.float32),
           0.1 * jax.random.normal(keys[5], (C,), jnp.float32),
           jax.random.uniform(keys[6], (C,), jnp.float32, 0.5, 1.5))
    bn2 = (jax.random.uniform(keys[7], (C,), jnp.float32, 0.5, 1.5),
           0.1 * jax.random.normal(keys[8], (C,), jnp.float32),
           0.1 * jax.random.normal(keys[9], (C,), jnp.float32),
           jax.random.uniform(keys[10], (C,), jnp.float32, 0.5, 1.5))

    out = jax.block_until_ready(resblock_pallas(x, w1, w2, bn1, bn2))
    ref = jax.block_until_ready(resblock_ref(x, w1, w2, bn1, bn2))

    assert out.shape == (B, C, H, W)
    err = float(jnp.max(jnp.abs(out - ref)))
    assert err < 2e-2, f"max abs err {err}"

    print("KERNEL_OK")
</pallas_src>

<mosaic_0001>
module attributes {stable_mosaic.version = 11 : i64} {
  func.func @_resblock_kernel(%arg0: i32, %arg1: memref<1x16x256xbf16, #tpu.memory_space<vmem>>, %arg2: memref<16x144xbf16, #tpu.memory_space<vmem>>, %arg3: memref<16x144xbf16, #tpu.memory_space<vmem>>, %arg4: memref<16x4xf32, #tpu.memory_space<vmem>>, %arg5: memref<1x16x256xf32, #tpu.memory_space<vmem>>, %arg6: memref<144x256xbf16, #tpu.memory_space<vmem>>) attributes {dimension_semantics = [#tpu.dimension_semantics<parallel>], iteration_bounds = array<i64: 2>, scalar_prefetch = 0 : i64, scratch_operands = 1 : i64, tpu.core_type = #tpu.core_type<tc>, window_params = [{transform_indices = @transform_0, window_bounds = array<i64: 1, 16, 256>}, {pipeline_mode = #tpu.pipeline_mode<synchronous>, transform_indices = @transform_1, window_bounds = array<i64: 16, 144>}, {pipeline_mode = #tpu.pipeline_mode<synchronous>, transform_indices = @transform_2, window_bounds = array<i64: 16, 144>}, {pipeline_mode = #tpu.pipeline_mode<synchronous>, transform_indices = @transform_3, window_bounds = array<i64: 16, 4>}, {transform_indices = @transform_4, window_bounds = array<i64: 1, 16, 256>}]} {
    %0 = tpu.iota {dimensions = array<i32: 1>} : vector<1x256xi32>
    %c16_i32 = arith.constant 16 : i32
    %c0_i32 = arith.constant 0 : i32
    %1 = arith.cmpi eq, %c16_i32, %c0_i32 : i32
    %c1_i32 = arith.constant 1 : i32
    %2 = arith.select %1, %c1_i32, %c16_i32 : i32
    %3 = vector.broadcast %2 : i32 to vector<1x256xi32>
    %4 = arith.remsi %0, %3 : vector<1x256xi32>
    %c0_i32_0 = arith.constant 0 : i32
    %5 = vector.broadcast %c0_i32_0 : i32 to vector<1x256xi32>
    %6 = arith.cmpi ne, %4, %5 : vector<1x256xi32>
    %c0_i32_1 = arith.constant 0 : i32
    %7 = vector.broadcast %c0_i32_1 : i32 to vector<1x256xi32>
    %8 = arith.cmpi slt, %4, %7 : vector<1x256xi32>
    %c0_i32_2 = arith.constant 0 : i32
    %9 = arith.cmpi slt, %2, %c0_i32_2 : i32
    %10 = vector.broadcast %9 : i1 to vector<1x256xi1>
    %11 = vector.broadcast %10 : vector<1x256xi1> to vector<1x256xi1>
    %12 = arith.xori %8, %11 : vector<1x256xi1>
    %13 = arith.andi %12, %6 : vector<1x256xi1>
    %14 = vector.broadcast %2 : i32 to vector<1x256xi32>
    %15 = arith.addi %4, %14 : vector<1x256xi32>
    %16 = arith.select %13, %15, %4 : vector<1x256xi1>, vector<1x256xi32>
    %c14_i32 = arith.constant 14 : i32
    %17 = vector.broadcast %c14_i32 : i32 to vector<1x256xi32>
    %18 = arith.cmpi sle, %16, %17 : vector<1x256xi32>
    %c1_i32_3 = arith.constant 1 : i32
    %19 = vector.broadcast %c1_i32_3 : i32 to vector<1x256xi32>
    %20 = arith.cmpi sge, %16, %19 : vector<1x256xi32>
    %c0 = arith.constant 0 : index
    %c0_4 = arith.constant 0 : index
    %c0_5 = arith.constant 0 : index
    %21 = vector.load %arg1[%c0, %c0_4, %c0_5] : memref<1x16x256xbf16, #tpu.memory_space<vmem>>, vector<1x16x256xbf16>
    %22 = vector.shape_cast %21 : vector<1x16x256xbf16> to vector<16x256xbf16>
    %23 = arith.extf %22 : vector<16x256xbf16> to vector<16x256xf32>
    %cst = arith.constant 0.000000e+00 : f32
    %24 = vector.shape_cast %18 : vector<1x256xi1> to vector<1x256xi1>
    %25 = vector.broadcast %24 : vector<1x256xi1> to vector<16x256xi1>
    %26 = vector.broadcast %cst : f32 to vector<16x256xf32>
    %27 = arith.select %25, %23, %26 : vector<16x256xi1>, vector<16x256xf32>
    %cst_6 = arith.constant 0.000000e+00 : f32
    %28 = vector.shape_cast %20 : vector<1x256xi1> to vector<1x256xi1>
    %29 = vector.broadcast %28 : vector<1x256xi1> to vector<16x256xi1>
    %30 = vector.broadcast %cst_6 : f32 to vector<16x256xf32>
    %31 = arith.select %29, %23, %30 : vector<16x256xi1>, vector<16x256xf32>
    %cst_7 = arith.constant 0.000000e+00 : f32
    %32 = vector.broadcast %cst_7 : f32 to vector<16x17xf32>
    %33 = vector.extract_strided_slice %27 {offsets = [0, 0], sizes = [16, 239], strides = [1, 1]} : vector<16x256xf32> to vector<16x239xf32>
    %34 = tpu.concatenate %32, %33 in 1 : vector<16x17xf32>, vector<16x239xf32> -> vector<16x256xf32>
    %35 = arith.truncf %34 : vector<16x256xf32> to vector<16x256xbf16>
    %c0_8 = arith.constant 0 : index
    %c0_9 = arith.constant 0 : index
    %36 = vector.load %arg6[%c0_8, %c0_9] : memref<144x256xbf16, #tpu.memory_space<vmem>>, vector<16x256xbf16>
    tpu.vector_store %arg6[%c0_8, %c0_9], %35 {strides = array<i32>} : memref<144x256xbf16, #tpu.memory_space<vmem>>, vector<16x256xbf16>,
    %cst_10 = arith.constant 0.000000e+00 : f32
    %37 = vector.broadcast %cst_10 : f32 to vector<16x16xf32>
    %38 = vector.extract_strided_slice %23 {offsets = [0, 0], sizes = [16, 240], strides = [1, 1]} : vector<16x256xf32> to vector<16x240xf32>
    %39 = tpu.concatenate %37, %38 in 1 : vector<16x16xf32>, vector<16x240xf32> -> vector<16x256xf32>
    %40 = arith.truncf %39 : vector<16x256xf32> to vector<16x256xbf16>
    %c16 = arith.constant 16 : index
    %c0_11 = arith.constant 0 : index
    %41 = vector.load %arg6[%c16, %c0_11] : memref<144x256xbf16, #tpu.memory_space<vmem>>, vector<16x256xbf16>
    tpu.vector_store %arg6[%c16, %c0_11], %40 {strides = array<i32>} : memref<144x256xbf16, #tpu.memory_space<vmem>>, vector<16x256xbf16>,
    %cst_12 = arith.constant 0.000000e+00 : f32
    %42 = vector.broadcast %cst_12 : f32 to vector<16x15xf32>
    %43 = vector.extract_strided_slice %31 {offsets = [0, 0], sizes = [16, 241], strides = [1, 1]} : vector<16x256xf32> to vector<16x241xf32>
    %44 = tpu.concatenate %42, %43 in 1 : vector<16x15xf32>, vector<16x241xf32> -> vector<16x256xf32>
    %45 = arith.truncf %44 : vector<16x256xf32> to vector<16x256xbf16>
    %c32 = arith.constant 32 : index
    %c0_13 = arith.constant 0 : index
    %46 = vector.load %arg6[%c32, %c0_13] : memref<144x256xbf16, #tpu.memory_space<vmem>>, vector<16x256xbf16>
    tpu.vector_store %arg6[%c32, %c0_13], %45 {strides = array<i32>} : memref<144x256xbf16, #tpu.memory_space<vmem>>, vector<16x256xbf16>,
    %cst_14 = arith.constant 0.000000e+00 : f32
    %47 = vector.broadcast %cst_14 : f32 to vector<16x1xf32>
    %48 = vector.extract_strided_slice %27 {offsets = [0, 0], sizes = [16, 255], strides = [1, 1]} : vector<16x256xf32> to vector<16x255xf32>
    %49 = tpu.concatenate %47, %48 in 1 : vector<16x1xf32>, vector<16x255xf32> -> vector<16x256xf32>
    %50 = arith.truncf %49 : vector<16x256xf32> to vector<16x256xbf16>
    %c48 = arith.constant 48 : index
    %c0_15 = arith.constant 0 : index
    %51 = vector.load %arg6[%c48, %c0_15] : memref<144x256xbf16, #tpu.memory_space<vmem>>, vector<16x256xbf16>
    tpu.vector_store %arg6[%c48, %c0_15], %50 {strides = array<i32>} : memref<144x256xbf16, #tpu.memory_space<vmem>>, vector<16x256xbf16>,
    %52 = arith.truncf %23 : vector<16x256xf32> to vector<16x256xbf16>
    %c64 = arith.constant 64 : index
    %c0_16 = arith.constant 0 : index
    %53 = vector.load %arg6[%c64, %c0_16] : memref<144x256xbf16, #tpu.memory_space<vmem>>, vector<16x256xbf16>
    tpu.vector_store %arg6[%c64, %c0_16], %52 {strides = array<i32>} : memref<144x256xbf16, #tpu.memory_space<vmem>>, vector<16x256xbf16>,
    %54 = vector.extract_strided_slice %31 {offsets = [0, 1], sizes = [16, 255], strides = [1, 1]} : vector<16x256xf32> to vector<16x255xf32>
    %cst_17 = arith.constant 0.000000e+00 : f32
    %55 = vector.broadcast %cst_17 : f32 to vector<16x1xf32>
    %56 = tpu.concatenate %54, %55 in 1 : vector<16x255xf32>, vector<16x1xf32> -> vector<16x256xf32>
    %57 = arith.truncf %56 : vector<16x256xf32> to vector<16x256xbf16>
    %c80 = arith.constant 80 : index
    %c0_18 = arith.constant 0 : index
    %58 = vector.load %arg6[%c80, %c0_18] : memref<144x256xbf16, #tpu.memory_space<vmem>>, vector<16x256xbf16>
    tpu.vector_store %arg6[%c80, %c0_18], %57 {strides = array<i32>} : memref<144x256xbf16, #tpu.memory_space<vmem>>, vector<16x256xbf16>,
    %59 = vector.extract_strided_slice %27 {offsets = [0, 15], sizes = [16, 241], strides = [1, 1]} : vector<16x256xf32> to vector<16x241xf32>
    %cst_19 = arith.constant 0.000000e+00 : f32
    %60 = vector.broadcast %cst_19 : f32 to vector<16x15xf32>
    %61 = tpu.concatenate %59, %60 in 1 : vector<16x241xf32>, vector<16x15xf32> -> vector<16x256xf32>
    %62 = arith.truncf %61 : vector<16x256xf32> to vector<16x256xbf16>
    %c96 = arith.constant 96 : index
    %c0_20 = arith.constant 0 : index
    %63 = vector.load %arg6[%c96, %c0_20] : memref<144x256xbf16, #tpu.memory_space<vmem>>, vector<16x256xbf16>
    tpu.vector_store %arg6[%c96, %c0_20], %62 {strides = array<i32>} : memref<144x256xbf16, #tpu.memory_space<vmem>>, vector<16x256xbf16>,
    %64 = vector.extract_strided_slice %23 {offsets = [0, 16], sizes = [16, 240], strides = [1, 1]} : vector<16x256xf32> to vector<16x240xf32>
    %cst_21 = arith.constant 0.000000e+00 : f32
    %65 = vector.broadcast %cst_21 : f32 to vector<16x16xf32>
    %66 = tpu.concatenate %64, %65 in 1 : vector<16x240xf32>, vector<16x16xf32> -> vector<16x256xf32>
    %67 = arith.truncf %66 : vector<16x256xf32> to vector<16x256xbf16>
    %c112 = arith.constant 112 : index
    %c0_22 = arith.constant 0 : index
    %68 = vector.load %arg6[%c112, %c0_22] : memref<144x256xbf16, #tpu.memory_space<vmem>>, vector<16x256xbf16>
    tpu.vector_store %arg6[%c112, %c0_22], %67 {strides = array<i32>} : memref<144x256xbf16, #tpu.memory_space<vmem>>, vector<16x256xbf16>,
    %69 = vector.extract_strided_slice %31 {offsets = [0, 17], sizes = [16, 239], strides = [1, 1]} : vector<16x256xf32> to vector<16x239xf32>
    %cst_23 = arith.constant 0.000000e+00 : f32
    %70 = vector.broadcast %cst_23 : f32 to vector<16x17xf32>
    %71 = tpu.concatenate %69, %70 in 1 : vector<16x239xf32>, vector<16x17xf32> -> vector<16x256xf32>
    %72 = arith.truncf %71 : vector<16x256xf32> to vector<16x256xbf16>
    %c128 = arith.constant 128 : index
    %c0_24 = arith.constant 0 : index
    %73 = vector.load %arg6[%c128, %c0_24] : memref<144x256xbf16, #tpu.memory_space<vmem>>, vector<16x256xbf16>
    tpu.vector_store %arg6[%c128, %c0_24], %72 {strides = array<i32>} : memref<144x256xbf16, #tpu.memory_space<vmem>>, vector<16x256xbf16>,
    %c0_25 = arith.constant 0 : index
    %c0_26 = arith.constant 0 : index
    %74 = vector.load %arg2[%c0_25, %c0_26] : memref<16x144xbf16, #tpu.memory_space<vmem>>, vector<16x144xbf16>
    %c0_27 = arith.constant 0 : index
    %c0_28 = arith.constant 0 : index
    %75 = vector.load %arg6[%c0_27, %c0_28] : memref<144x256xbf16, #tpu.memory_space<vmem>>, vector<144x256xbf16>
    %cst_29 = arith.constant dense<0.000000e+00> : vector<16x256xf32>
    %76 = tpu.matmul %74, %75, %cst_29 {dimension_numbers = #tpu.dot_dimension_numbers<[1], [0], [0], [1], [0, 0, 1, 1], [], []>} : vector<16x144xbf16>, vector<144x256xbf16>, vector<16x256xf32> -> vector<16x256xf32>
    %c0_30 = arith.constant 0 : index
    %c0_31 = arith.constant 0 : index
    %77 = vector.load %arg4[%c0_30, %c0_31] : memref<16x4xf32, #tpu.memory_space<vmem>>, vector<16x1xf32>
    %78 = vector.broadcast %77 : vector<16x1xf32> to vector<16x256xf32>
    %79 = arith.mulf %76, %78 : vector<16x256xf32>
    %c0_32 = arith.constant 0 : index
    %c1 = arith.constant 1 : index
    %80 = vector.load %arg4[%c0_32, %c1] : memref<16x4xf32, #tpu.memory_space<vmem>>, vector<16x1xf32>
    %81 = vector.broadcast %80 : vector<16x1xf32> to vector<16x256xf32>
    %82 = arith.addf %79, %81 : vector<16x256xf32>
    %cst_33 = arith.constant 0.000000e+00 : f32
    %83 = vector.broadcast %cst_33 : f32 to vector<16x256xf32>
    %84 = arith.maximumf %82, %83 : vector<16x256xf32>
    %cst_34 = arith.constant 0.000000e+00 : f32
    %85 = vector.shape_cast %18 : vector<1x256xi1> to vector<1x256xi1>
    %86 = vector.broadcast %85 : vector<1x256xi1> to vector<16x256xi1>
    %87 = vector.broadcast %cst_34 : f32 to vector<16x256xf32>
    %88 = arith.select %86, %84, %87 : vector<16x256xi1>, vector<16x256xf32>
    %cst_35 = arith.constant 0.000000e+00 : f32
    %89 = vector.shape_cast %20 : vector<1x256xi1> to vector<1x256xi1>
    %90 = vector.broadcast %89 : vector<1x256xi1> to vector<16x256xi1>
    %91 = vector.broadcast %cst_35 : f32 to vector<16x256xf32>
    %92 = arith.select %90, %84, %91 : vector<16x256xi1>, vector<16x256xf32>
    %cst_36 = arith.constant 0.000000e+00 : f32
    %93 = vector.broadcast %cst_36 : f32 to vector<16x17xf32>
    %94 = vector.extract_strided_slice %88 {offsets = [0, 0], sizes = [16, 239], strides = [1, 1]} : vector<16x256xf32> to vector<16x239xf32>
    %95 = tpu.concatenate %93, %94 in 1 : vector<16x17xf32>, vector<16x239xf32> -> vector<16x256xf32>
    %96 = arith.truncf %95 : vector<16x256xf32> to vector<16x256xbf16>
    %c0_37 = arith.constant 0 : index
    %c0_38 = arith.constant 0 : index
    %97 = vector.load %arg6[%c0_37, %c0_38] : memref<144x256xbf16, #tpu.memory_space<vmem>>, vector<16x256xbf16>
    tpu.vector_store %arg6[%c0_37, %c0_38], %96 {strides = array<i32>} : memref<144x256xbf16, #tpu.memory_space<vmem>>, vector<16x256xbf16>,
    %cst_39 = arith.constant 0.000000e+00 : f32
    %98 = vector.broadcast %cst_39 : f32 to vector<16x16xf32>
    %99 = vector.extract_strided_slice %84 {offsets = [0, 0], sizes = [16, 240], strides = [1, 1]} : vector<16x256xf32> to vector<16x240xf32>
    %100 = tpu.concatenate %98, %99 in 1 : vector<16x16xf32>, vector<16x240xf32> -> vector<16x256xf32>
    %101 = arith.truncf %100 : vector<16x256xf32> to vector<16x256xbf16>
    %c16_40 = arith.constant 16 : index
    %c0_41 = arith.constant 0 : index
    %102 = vector.load %arg6[%c16_40, %c0_41] : memref<144x256xbf16, #tpu.memory_space<vmem>>, vector<16x256xbf16>
    tpu.vector_store %arg6[%c16_40, %c0_41], %101 {strides = array<i32>} : memref<144x256xbf16, #tpu.memory_space<vmem>>, vector<16x256xbf16>,
    %cst_42 = arith.constant 0.000000e+00 : f32
    %103 = vector.broadcast %cst_42 : f32 to vector<16x15xf32>
    %104 = vector.extract_strided_slice %92 {offsets = [0, 0], sizes = [16, 241], strides = [1, 1]} : vector<16x256xf32> to vector<16x241xf32>
    %105 = tpu.concatenate %103, %104 in 1 : vector<16x15xf32>, vector<16x241xf32> -> vector<16x256xf32>
    %106 = arith.truncf %105 : vector<16x256xf32> to vector<16x256xbf16>
    %c32_43 = arith.constant 32 : index
    %c0_44 = arith.constant 0 : index
    %107 = vector.load %arg6[%c32_43, %c0_44] : memref<144x256xbf16, #tpu.memory_space<vmem>>, vector<16x256xbf16>
    tpu.vector_store %arg6[%c32_43, %c0_44], %106 {strides = array<i32>} : memref<144x256xbf16, #tpu.memory_space<vmem>>, vector<16x256xbf16>,
    %cst_45 = arith.constant 0.000000e+00 : f32
    %108 = vector.broadcast %cst_45 : f32 to vector<16x1xf32>
    %109 = vector.extract_strided_slice %88 {offsets = [0, 0], sizes = [16, 255], strides = [1, 1]} : vector<16x256xf32> to vector<16x255xf32>
    %110 = tpu.concatenate %108, %109 in 1 : vector<16x1xf32>, vector<16x255xf32> -> vector<16x256xf32>
    %111 = arith.truncf %110 : vector<16x256xf32> to vector<16x256xbf16>
    %c48_46 = arith.constant 48 : index
    %c0_47 = arith.constant 0 : index
    %112 = vector.load %arg6[%c48_46, %c0_47] : memref<144x256xbf16, #tpu.memory_space<vmem>>, vector<16x256xbf16>
    tpu.vector_store %arg6[%c48_46, %c0_47], %111 {strides = array<i32>} : memref<144x256xbf16, #tpu.memory_space<vmem>>, vector<16x256xbf16>,
    %113 = arith.truncf %84 : vector<16x256xf32> to vector<16x256xbf16>
    %c64_48 = arith.constant 64 : index
    %c0_49 = arith.constant 0 : index
    %114 = vector.load %arg6[%c64_48, %c0_49] : memref<144x256xbf16, #tpu.memory_space<vmem>>, vector<16x256xbf16>
    tpu.vector_store %arg6[%c64_48, %c0_49], %113 {strides = array<i32>} : memref<144x256xbf16, #tpu.memory_space<vmem>>, vector<16x256xbf16>,
    %115 = vector.extract_strided_slice %92 {offsets = [0, 1], sizes = [16, 255], strides = [1, 1]} : vector<16x256xf32> to vector<16x255xf32>
    %cst_50 = arith.constant 0.000000e+00 : f32
    %116 = vector.broadcast %cst_50 : f32 to vector<16x1xf32>
    %117 = tpu.concatenate %115, %116 in 1 : vector<16x255xf32>, vector<16x1xf32> -> vector<16x256xf32>
    %118 = arith.truncf %117 : vector<16x256xf32> to vector<16x256xbf16>
    %c80_51 = arith.constant 80 : index
    %c0_52 = arith.constant 0 : index
    %119 = vector.load %arg6[%c80_51, %c0_52] : memref<144x256xbf16, #tpu.memory_space<vmem>>, vector<16x256xbf16>
    tpu.vector_store %arg6[%c80_51, %c0_52], %118 {strides = array<i32>} : memref<144x256xbf16, #tpu.memory_space<vmem>>, vector<16x256xbf16>,
    %120 = vector.extract_strided_slice %88 {offsets = [0, 15], sizes = [16, 241], strides = [1, 1]} : vector<16x256xf32> to vector<16x241xf32>
    %cst_53 = arith.constant 0.000000e+00 : f32
    %121 = vector.broadcast %cst_53 : f32 to vector<16x15xf32>
    %122 = tpu.concatenate %120, %121 in 1 : vector<16x241xf32>, vector<16x15xf32> -> vector<16x256xf32>
    %123 = arith.truncf %122 : vector<16x256xf32> to vector<16x256xbf16>
    %c96_54 = arith.constant 96 : index
    %c0_55 = arith.constant 0 : index
    %124 = vector.load %arg6[%c96_54, %c0_55] : memref<144x256xbf16, #tpu.memory_space<vmem>>, vector<16x256xbf16>
    tpu.vector_store %arg6[%c96_54, %c0_55], %123 {strides = array<i32>} : memref<144x256xbf16, #tpu.memory_space<vmem>>, vector<16x256xbf16>,
    %125 = vector.extract_strided_slice %84 {offsets = [0, 16], sizes = [16, 240], strides = [1, 1]} : vector<16x256xf32> to vector<16x240xf32>
    %cst_56 = arith.constant 0.000000e+00 : f32
    %126 = vector.broadcast %cst_56 : f32 to vector<16x16xf32>
    %127 = tpu.concatenate %125, %126 in 1 : vector<16x240xf32>, vector<16x16xf32> -> vector<16x256xf32>
    %128 = arith.truncf %127 : vector<16x256xf32> to vector<16x256xbf16>
    %c112_57 = arith.constant 112 : index
    %c0_58 = arith.constant 0 : index
    %129 = vector.load %arg6[%c112_57, %c0_58] : memref<144x256xbf16, #tpu.memory_space<vmem>>, vector<16x256xbf16>
    tpu.vector_store %arg6[%c112_57, %c0_58], %128 {strides = array<i32>} : memref<144x256xbf16, #tpu.memory_space<vmem>>, vector<16x256xbf16>,
    %130 = vector.extract_strided_slice %92 {offsets = [0, 17], sizes = [16, 239], strides = [1, 1]} : vector<16x256xf32> to vector<16x239xf32>
    %cst_59 = arith.constant 0.000000e+00 : f32
    %131 = vector.broadcast %cst_59 : f32 to vector<16x17xf32>
    %132 = tpu.concatenate %130, %131 in 1 : vector<16x239xf32>, vector<16x17xf32> -> vector<16x256xf32>
    %133 = arith.truncf %132 : vector<16x256xf32> to vector<16x256xbf16>
    %c128_60 = arith.constant 128 : index
    %c0_61 = arith.constant 0 : index
    %134 = vector.load %arg6[%c128_60, %c0_61] : memref<144x256xbf16, #tpu.memory_space<vmem>>, vector<16x256xbf16>
    tpu.vector_store %arg6[%c128_60, %c0_61], %133 {strides = array<i32>} : memref<144x256xbf16, #tpu.memory_space<vmem>>, vector<16x256xbf16>,
    %c0_62 = arith.constant 0 : index
    %c0_63 = arith.constant 0 : index
    %135 = vector.load %arg3[%c0_62, %c0_63] : memref<16x144xbf16, #tpu.memory_space<vmem>>, vector<16x144xbf16>
    %c0_64 = arith.constant 0 : index
    %c0_65 = arith.constant 0 : index
    %136 = vector.load %arg6[%c0_64, %c0_65] : memref<144x256xbf16, #tpu.memory_space<vmem>>, vector<144x256xbf16>
    %cst_66 = arith.constant dense<0.000000e+00> : vector<16x256xf32>
    %137 = tpu.matmul %135, %136, %cst_66 {dimension_numbers = #tpu.dot_dimension_numbers<[1], [0], [0], [1], [0, 0, 1, 1], [], []>} : vector<16x144xbf16>, vector<144x256xbf16>, vector<16x256xf32> -> vector<16x256xf32>
    %c0_67 = arith.constant 0 : index
    %c2 = arith.constant 2 : index
    %138 = vector.load %arg4[%c0_67, %c2] : memref<16x4xf32, #tpu.memory_space<vmem>>, vector<16x1xf32>
    %139 = vector.broadcast %138 : vector<16x1xf32> to vector<16x256xf32>
    %140 = arith.mulf %137, %139 : vector<16x256xf32>
    %c0_68 = arith.constant 0 : index
    %c3 = arith.constant 3 : index
    %141 = vector.load %arg4[%c0_68, %c3] : memref<16x4xf32, #tpu.memory_space<vmem>>, vector<16x1xf32>
    %142 = vector.broadcast %141 : vector<16x1xf32> to vector<16x256xf32>
    %143 = arith.addf %140, %142 : vector<16x256xf32>
    %144 = arith.addf %143, %23 : vector<16x256xf32>
    %cst_69 = arith.constant 0.000000e+00 : f32
    %145 = vector.broadcast %cst_69 : f32 to vector<16x256xf32>
    %146 = arith.maximumf %144, %145 : vector<16x256xf32>
    %c0_70 = arith.constant 0 : index
    %c0_71 = arith.constant 0 : index
    %c0_72 = arith.constant 0 : index
    %147 = vector.load %arg5[%c0_70, %c0_71, %c0_72] : memref<1x16x256xf32, #tpu.memory_space<vmem>>, vector<1x16x256xf32>
    %148 = vector.shape_cast %147 : vector<1x16x256xf32> to vector<16x256xf32>
    %149 = vector.shape_cast %146 : vector<16x256xf32> to vector<1x16x256xf32>
    tpu.vector_store %arg5[%c0_70, %c0_71, %c0_72], %149 {strides = array<i32>} : memref<1x16x256xf32, #tpu.memory_space<vmem>>, vector<1x16x256xf32>,
    return
  }
  func.func @transform_0(%arg0: i32) -> (i32, i32, i32) {
    %c0_i32 = arith.constant 0 : i32
    %c0_i32_0 = arith.constant 0 : i32
    %c0_i32_1 = arith.constant 0 : i32
    return %arg0, %c0_i32, %c0_i32_0 : i32, i32, i32
  }
  func.func @transform_1(%arg0: i32) -> (i32, i32) {
    %c0_i32 = arith.constant 0 : i32
    %c0_i32_0 = arith.constant 0 : i32
    %c0_i32_1 = arith.constant 0 : i32
    return %c0_i32, %c0_i32_0 : i32, i32
  }
  func.func @transform_2(%arg0: i32) -> (i32, i32) {
    %c0_i32 = arith.constant 0 : i32
    %c0_i32_0 = arith.constant 0 : i32
    %c0_i32_1 = arith.constant 0 : i32
    return %c0_i32, %c0_i32_0 : i32, i32
  }
  func.func @transform_3(%arg0: i32) -> (i32, i32) {
    %c0_i32 = arith.constant 0 : i32
    %c0_i32_0 = arith.constant 0 : i32
    %c0_i32_1 = arith.constant 0 : i32
    return %c0_i32, %c0_i32_0 : i32, i32
  }
  func.func @transform_4(%arg0: i32) -> (i32, i32, i32) {
    %c0_i32 = arith.constant 0 : i32
    %c0_i32_0 = arith.constant 0 : i32
    %c0_i32_1 = arith.constant 0 : i32
    return %arg0, %c0_i32, %c0_i32_0 : i32, i32, i32
  }
}

</mosaic_0001>

<bundles_post_ra>
// kernel: tpu_custom_call.1
= control target key start
LH: loop header
LB: loop body
LE: loop exit
PB: predicated region body
PF: predicated region fallthrough
CT: control target
= control target key end

     0   :  { %9 = vsyncpa [#allocation4], 0  ;;  %s2022_s0 = inlined_call_operand.hbm [shape: bf16[2,16,256], index: 0, kind: input, shape index: {}]   ;;  %s2023_s1 = inlined_call_operand.vmem [shape: bf16[16,144], index: 1, kind: input, shape index: {}]   ;;  %s2024_s2 = inlined_call_operand.hbm [shape: bf16[16,144], index: 2, kind: input, shape index: {}]   ;;  %s2025_s3 = inlined_call_operand.vmem [shape: f32[16,4], index: 3, kind: input, shape index: {}]   ;;  %s2026_s4 = inlined_call_operand.hbm [shape: f32[2,16,256], index: 4, kind: output, shape index: {}]  }
   0x1   :  { %11 = vsyncpa [#allocation4 + $0x1], 0 }
   0x2   :  { %12 = vsyncpa [#allocation7], 0 }
   0x3   :  { %13 = vsyncpa [#allocation5], 0 }
   0x4   :  { %15 = vsyncpa [#allocation5 + $0x1], 0  ;;  %s1491_s15 = smov 0   ;;  %s1493_s16 = smov 0  }
   0x5   :  { %s1495_s17 = smov 0   ;;  %s1497_s18 = smov 0  }
   0x6 LB: > { %s1512_s19 = sadd.s32 4294967295, %s1446_s18   ;;  %s980_s20 = sadd.s32 4294967294, %s1446_s18   ;;  %s1446_s18 = sphi %s1497_s18, %s2090_s18   ;;  %s1442_s17 = sphi %s1495_s17, %s2089_s17   ;;  %s1438_s16 = sphi %s1493_s16, %s2088_s16   ;;  %s1434_s15 = sphi %s1491_s15, %s2087_s15  }
   0x7   : > { %p41_p0 = scmp.ne.s32.totalorder %s1438_s16, %s1434_s15  ;;  %p2027_p1 = scmp.eq.s32.totalorder %s1512_s19, 0 }
   0x8   : > { %p134_p3 = scmp.eq.s32.totalorder %s980_s20, 1  ;;  %p981_p5 = scmp.ge.s32.totalorder %s1446_s18, 1 }
   0x9   : > { %p1521_p4 = por %p2027_p1, %p41_p0  ;;  %p141_p7 = scmp.lt.s32.totalorder %s1446_s18, 3 }
   0xa   : > { %p1526_p6 = por %p134_p3, %p41_p0  ;;  %s1448_s24 = smov [#allocation6]  }
   0xb   : > { %s2038_s21 = scalar_select %p1521_p4, 1, 0 }
   0xc   : > { %s2039_s22 = scalar_select %p1526_p6, 1, 0 }
   0xd   : > { %p1531_p8 = pnand %p981_p5, %p141_p7  ;;  %s156_s25 = sshll.u32 %s1448_s24, 4  ;;  %s1535_s25 = int_to_ptr.vmem [resolvable:$true] %s156_s25 }
   0xe   : > { %s1547_s27 = sadd.s32 1, %s1446_s18   ;;  %s28_s28 = sadd.s32 1, %s1442_s17 }
   0xf   : > { %s2040_s23 = scalar_select %p1531_p8, 1, 0 }
  0x10   : > { %p1078_p9 = pneg %p1531_p8  ;;  %s25_s29 = ssub.s32 %s1446_s18, %s1547_s27 }
  0x11   : > { %s1318_s6 = scalar_lea.hbm %s2024_s2, 256 }
  0x12   : > { %p1542_p11 = pnand %p1078_p9, %p2027_p1  ;;  %p1319_p12 = scmp.ne.s32.totalorder %s2024_s2, %s1318_s6 }
  0x13   : > { %p1325_p5 = scmp.lt.u32.totalorder %s1318_s6, %s2024_s2 }
  0x14   : > { %p1320_p13 = pneg %p1542_p11 }
  0x16   : > { %p1321_p0 = pnand %p1320_p13, %p1319_p12 }
  0x18   : > { %p1322_p3 = pneg %p1321_p0 }
  0x1a   : > { %p1327_p7 = pnand %p1325_p5, %p1322_p3 }
  0x1c   : > { %1330 = shalt.err (!%p1327_p7)
}
  0x1d   : > { %s1331_s11 = scalar_lea.vmem %s1535_s25, 256  ;;  %p1339_p2 = scmp.lt.s32.totalorder %s1535_s25, %s1535_s25 }
  0x1e   : > { %p1332_p9 = scmp.ne.s32.totalorder %s1535_s25, %s1331_s11  ;;  %p1340_p6 = scmp.lt.s32.totalorder %s1331_s11, %s1331_s11 }
  0x20   : > { %p1334_p10 = pnand %p1332_p9, %p1320_p13  ;;  %p1341_p4 = por %p1340_p6, %p1339_p2 }
  0x22   : > { %p1335_p1 = pneg %p1334_p10 }
  0x24   : > { %p1342_p8 = pnand %p1341_p4, %p1335_p1 }
  0x26   : > { %1345 = shalt.err (!%p1342_p8)
}
  0x27   : > { %s1449_s12 = smov 128   ;;  %s1450_s13 = smov 8  }
  0x28   : > { %1081 = dma.hbm_to_vmem [thread:$0]  (!%p1542_p11), %s2024_s2, 256, %s1535_s25, [#allocation7], %s1449_s12, %s1449_s12, %s1450_s13  }
  0x29   : > { %p26_p1 = scmp.eq.s32.totalorder %s25_s29, 0  ;;  %p35_p2 = scmp.ne.s32.totalorder %s1442_s17, %s1438_s16 }
  0x2a   : > { %p36_p4 = scmp.eq.s32.totalorder %s1446_s18, 0  ;;  %p1091_p6 = scmp.lt.s32.totalorder %s1446_s18, 2 }
  0x2b   : > { %s1581_s24 = scalar_select %p26_p1, %s1442_s17, %s28_s28  }
  0x2c   : > { %p37_p8 = por %p36_p4, %p35_p2  ;;  %p2042_p10 = scmp.eq.s32.totalorder %s1512_s19, 1 }
  0x2d   : > { %s173_s26 = sand.u32 1, %s1442_s17   ;;  %s1004_s5 = sshll.u32 %s1446_s18, 8 }
  0x2e   : > { %p1585_p12 = por %p2042_p10, %p35_p2  ;;  %s984_s6 = sshll.u32 %s173_s26, 4 }
  0x2f   : > { %s1594_s9 = scalar_lea.hbm %s2022_s0, %s1004_s5  ;;  %s177_s25 = scalar_lea.vmem [#allocation3], %s984_s6 }
  0x30   : > { %s184_s28 = sshll.u32 %s177_s25, 4  ;;  %p1596_p11 = pnand %p1091_p6, %p37_p8  ;;  %s1600_s28 = int_to_ptr.vmem [resolvable:$true] %s184_s28 }
  0x31   : > { %s1602_s10 = scalar_lea.sflag [#allocation4], %s173_s26  ;;  %s1346_s11 = scalar_lea.hbm %s1594_s9, 256 }
  0x32   : > { %p1347_p13 = scmp.ne.s32.totalorder %s1594_s9, %s1346_s11  ;;  %p1348_p0 = pneg %p1596_p11 }
  0x33   : > { %s1351_s5 = scalar_lea.hbm %s2022_s0, 512  ;;  %p1352_p7 = scmp.lt.u32.totalorder %s1594_s9, %s2022_s0 }
  0x34   : > { %p1349_p3 = pnand %p1348_p0, %p1347_p13  ;;  %p1353_p9 = scmp.lt.u32.totalorder %s1351_s5, %s1346_s11 }
  0x35   : > { %p1355_p2 = scmp.lt.u32.totalorder %s1346_s11, %s1594_s9 }
  0x36   : > { %p1350_p5 = pneg %p1349_p3  ;;  %p1354_p1 = por %p1353_p9, %p1352_p7 }
  0x38   : > { %p1356_p4 = por %p1355_p2, %p1354_p1 }
  0x3a   : > { %p1357_p6 = pnand %p1356_p4, %p1350_p5 }
  0x3c   : > { %1360 = shalt.err (!%p1357_p6)
}
  0x3d   : > { %s1361_s26 = scalar_lea.vmem %s1600_s28, 256  ;;  %s1451_s8 = smov [#allocation3]  }
  0x3e   : > { %p1362_p8 = scmp.ne.s32.totalorder %s1600_s28, %s1361_s26  ;;  %s1366_s25 = sshll.u32 %s1451_s8, 4  ;;  %s1367_s25 = int_to_ptr.vmem [resolvable:$false] %s1366_s25 }
  0x3f   : > { %s1368_s14 = scalar_lea.vmem %s1367_s25, 512  ;;  %p1369_p3 = scmp.lt.s32.totalorder %s1600_s28, %s1367_s25 }
  0x40   : > { %p1364_p10 = pnand %p1362_p8, %p1348_p0  ;;  %p1370_p7 = scmp.lt.s32.totalorder %s1368_s14, %s1361_s26 }
  0x42   : > { %p1365_p13 = pneg %p1364_p10  ;;  %p1371_p9 = por %p1370_p7, %p1369_p3 }
  0x44   : > { %p1372_p1 = pnand %p1371_p9, %p1365_p13 }
  0x46   : > { %1375 = shalt.err (!%p1372_p1)
}
  0x47   : > { %1085 = dma.hbm_to_vmem [thread:$0]  (!%p1596_p11), %s1594_s9, 256, %s1600_s28, %s1602_s10, %s1449_s12, %s1449_s12, %s1450_s13  }
  0x48   : > { %p2045_p0 = scmp.ne.s32.totalorder %s2040_s23, 0 }
  0x49   : > { %s1636_s11 = sand.u32 (!%p2045_p0), 1, %s1438_s16   ;;  %p2046_p5 = scmp.ne.s32.totalorder (!%p2045_p0), %s2038_s21, 0 }
  0x4a   : > { %196 = sbr.rel (%p2045_p0) target bundleno = 877 (0x36d), region = 36  ;;  %s988_s20 = sshll.u32 (!%p2045_p0), %s1636_s11, 4 }
  0x4b   : > { %s199_s5 = scalar_lea.sflag (!%p2045_p0), [#allocation4], %s1636_s11  ;;  %s202_s6 = scalar_lea.vmem (!%p2045_p0), [#allocation3], %s988_s20 }
  0x51   : > { %1421 = dma.done.wait (%p2046_p5), %s199_s5, 256  }
  0x52   : > { %1423 = vsyncadd (%p2046_p5), %s199_s5, 4294967040  ;;  %p2047_p2 = scmp.eq.s32.totalorder %s1512_s19, 0 }
  0x54   : > { %1425 = dma.done.wait (%p2047_p2), [#allocation7], 256   ;;  %p2048_p11 = pmov %p2047_p2 }
  0x55   : > { %v232_v0 = vlaneseq  ;;  %v1648_v5 = vld [vmem:[%s202_s6] sm:$0xff]  ;;  %v1654_v7 = vld [vmem:[%s202_s6 + $0x8] sm:$0xff]  ;;  %s1452_s21 = smov 16   ;;  %s1453_s23 = smov 17   ;;  %vm322_vm4 = vcmask 130048   ;;  %v1460_v34 = vmov 0  }
  0x56   : > { %1427 = vsyncadd (%p2048_p11), [#allocation7], 4294967040  ;;  %v1657_v8 = vunpack.c.l.bf16 %v1648_v5  ;;  %v1660_v9 = vunpack.c.h.bf16 %v1648_v5  ;;  %v1667_v11 = vunpack.c.l.bf16 %v1654_v7  ;;  %v1670_v12 = vunpack.c.h.bf16 %v1654_v7  ;;  %s1454_s12 = smov 15   ;;  %s1455_s13 = smov 1   ;;  %v1314_v31 = vld [vmem:[%s2023_s1 + $0x4] ss:$8 sps:$4 sm:$0xff]   ;;  %1223 = vset.pattern.permute.xlu1 %v1460_v34  ;;  %1222 = vset.pattern.permute.xlu0 %v1460_v34 }
  0x57   : > { %v233_v1 = vand.u32 127, %v232_v0  ;;  %v992_v29 = vcombine.high %v1648_v5, %v1654_v7  ;;  %v991_v30 = vcombine.low %v1648_v5, %v1654_v7  ;;  %s1456_s9 = smov 127   ;;  %s1457_s28 = smov 113   ;;  %995 = vmatprep.mubr.msk.bf16.mxu0 %vm322_vm4, %v1314_v31  ;;  %v1735_v32 = vld [vmem:[%s2025_s3 + $0x8] sm:$0xff]  ;;  %v1740_v33 = vld [vmem:[%s2025_s3] sm:$0xff]  ;;  %v1461_v35 = vmov 1   ;;  %vm1759_vm9 = vmneg %vm322_vm4 }
  0x58   : > { %v1152_v15 = vpack.i.bf16 %v1660_v9, %v1657_v8  ;;  %v1157_v21 = vpack.i.bf16 %v1670_v12, %v1667_v11  ;;  %s1458_s29 = smov 112   ;;  %s1459_s10 = smov 111   ;;  %vm297_vm5 = vcmask 138240   ;;  %vm2034_vm7 = vcmask 121856   ;;  %vm2036_vm11 = vmpackc.low %vm1759_vm9, %vm1759_vm9  ;;  %v1317_v10 = vld [vmem:[#allocation6 + $0x4] ss:$8 sps:$4 sm:$0xff]  }
  0x59   : > { %v234_v2 = vadd.s32 128, %v233_v1  ;;  %v239_v3 = vand.u32 15, %v233_v1  ;;  %vm1747_vm6 = vmneg %vm297_vm5  ;;  %vm2030_vm10 = vcmask 7168   ;;  %998 = vmatprep.mubr.msk.bf16.mxu1 %vm322_vm4, %v1317_v10  ;;  %v1462_v14 = vmov 2   ;;  %s1464_s26 = smov [#allocation8]  }
  0x5a   : > { %1153 = vrot.lane.b32.xlu1 %v1152_v15, %s1452_s21  ;;  %vm2037_vm8 = vmpackc.low %vm1747_vm6, %vm1747_vm6  ;;  %s1380_s8 = sshll.u32 %s1464_s26, 4  ;;  %s1381_s8 = int_to_ptr.vmem [resolvable:$false] %s1380_s8 }
  0x5b   : > { %v246_v4 = vand.u32 15, %v234_v2  ;;  %vm1650_vm0 = vcmp.le.s32.totalorder %v239_v3, 14  ;;  %vm1672_vm2 = vcmp.ge.s32.totalorder %v239_v3, 1  ;;  %vm1774_vm12 = vmneg %vm2034_vm7  ;;  %s1382_s25 = scalar_lea.vmem %s1381_s8, 1024 }
  0x5c   : > { %v273_v16 = vsel %vm1650_vm0, %v1657_v8, 0.0  ;;  %v275_v18 = vsel %vm1650_vm0, %v1667_v11, 0.0  ;;  %v283_v23 = vsel %vm1672_vm2, %v1667_v11, 0.0  ;;  %v281_v25 = vsel %vm1672_vm2, %v1657_v8, 0.0  ;;  %vm2031_vm13 = vmpackc.low %vm1774_vm12, %vm1774_vm12 }
  0x5d   : > { %vm1662_vm1 = vcmp.le.s32.totalorder %v246_v4, 14  ;;  %vm1676_vm3 = vcmp.ge.s32.totalorder %v246_v4, 1  ;;  %vm1789_vm14 = vmneg %vm2030_vm10 }
  0x5e   : > { %v274_v17 = vsel %vm1662_vm1, %v1660_v9, 0.0  ;;  %v276_v20 = vsel %vm1662_vm1, %v1670_v12, 0.0  ;;  %v284_v24 = vsel %vm1676_vm3, %v1670_v12, 0.0  ;;  %v282_v26 = vsel %vm1676_vm3, %v1660_v9, 0.0  ;;  %1158 = vrot.lane.b32.xlu1 %v1157_v21, %s1452_s21  ;;  %vm2032_vm15 = vmpackc.low %vm1789_vm14, %vm1789_vm14 }
  0x5f   : > { %v1142_v19 = vpack.i.bf16 %v274_v17, %v273_v16  ;;  %v1147_v22 = vpack.i.bf16 %v276_v20, %v275_v18  ;;  %v1167_v27 = vpack.i.bf16 %v284_v24, %v283_v23  ;;  %v1162_v28 = vpack.i.bf16 %v282_v26, %v281_v25 }
  0x61   : > { %1143 = vrot.lane.b32.xlu0 %v1142_v19, %s1453_s23 }
  0x62   : > { %1168 = vrot.lane.b32.xlu1 %v1167_v27, %s1454_s12 }
  0x65   : > { %1148 = vrot.lane.b32.xlu0 %v1147_v22, %s1453_s23 }
  0x66   : > { %1178 = vrot.lane.b32.xlu1 %v1147_v22, %s1455_s13 }
  0x69   : > { %1163 = vrot.lane.b32.xlu0 %v1162_v28, %s1454_s12 }
  0x6a   : > { %1188 = vrot.lane.b32.xlu1 %v1167_v27, %s1456_s9 }
  0x6d   : > { %1173 = vrot.lane.b32.xlu0 %v1142_v19, %s1455_s13 }
  0x6e   : > { %1198 = vrot.lane.b32.xlu1 %v1147_v22, %s1457_s28 }
  0x71   : > { %1183 = vrot.lane.b32.xlu0 %v1162_v28, %s1456_s9 }
  0x72   : > { %1208 = vrot.lane.b32.xlu1 %v1157_v21, %s1458_s29 }
  0x75   : > { %1193 = vrot.lane.b32.xlu0 %v1142_v19, %s1457_s28 }
  0x76   : > { %1218 = vrot.lane.b32.xlu1 %v1167_v27, %s1459_s10 }
  0x79   : > { %1203 = vrot.lane.b32.xlu0 %v1152_v15, %s1458_s29 }
  0x7a   : > { %561 = vperm.xlu1 %1223, %v1735_v32  }
  0x7d   : > { %1213 = vrot.lane.b32.xlu0 %v1162_v28, %s1459_s10 }
  0x7e   : > { %1224 = vset.pattern.permute.xlu1 %v1461_v35 }
  0x7f   : > { %569 = vperm.xlu1 %1224, %v1740_v33  }
  0x81   : > { %556 = vperm.xlu0 %1222, %v1740_v33  }
  0x83   : > { %1307 = vset.pattern.permute.xlu1 %v1462_v14 }
  0x85   : > { %1225 = vset.pattern.permute.xlu0 %v1461_v35 }
  0x86   : > { %573 = vperm.xlu0 %1225, %v1735_v32  }
  0x8a   : > { %1306 = vset.pattern.permute.xlu0 %v1462_v14 }
  0xcc   : > { %v1154_v36 = vpop.permute.xlu1 %1153 }
  0xcd   : > { %v1156_v38 = vunpack.i.h.bf16 %v1154_v36  ;;  %v1155_v39 = vunpack.i.l.bf16 %v1154_v36 }
  0xcf   : > { %v323_v52 = vsel %vm322_vm4, %v1155_v39, %v1156_v38 }
  0xd0   : > { %v1159_v42 = vpop.permute.xlu1 %1158 }
  0xd1   : > { %v1161_v43 = vunpack.i.h.bf16 %v1159_v42  ;;  %v1160_v44 = vunpack.i.l.bf16 %v1159_v42 }
  0xd3   : > { %v1144_v37 = vpop.permute.xlu0 %1143  ;;  %v324_v53 = vsel %vm322_vm4, %v1160_v44, %v1161_v43  ;;  %v1014_v16 = vpack.c.bf16 %v1160_v44, %v1155_v39 }
  0xd4   : > { %v1146_v40 = vunpack.i.h.bf16 %v1144_v37  ;;  %v1145_v41 = vunpack.i.l.bf16 %v1144_v37  ;;  %v1169_v51 = vpop.permute.xlu1 %1168  ;;  %v332_v62 = vpack.c.bf16 %v324_v53, %v323_v52 }
  0xd5   : > { %v1171_v55 = vunpack.i.h.bf16 %v1169_v51  ;;  %v1170_v56 = vunpack.i.l.bf16 %v1169_v51 }
  0xd6   : > { %v298_v49 = vsel %vm297_vm5, %v1145_v41, %v1146_v40 }
  0xd7   : > { %v1149_v45 = vpop.permute.xlu0 %1148  ;;  %v349_v63 = vsel %vm2034_vm7, %v1170_v56, %v1171_v55 }
  0xd8   : > { %v1151_v46 = vunpack.i.h.bf16 %v1149_v45  ;;  %v1150_v47 = vunpack.i.l.bf16 %v1149_v45  ;;  %v1179_v0 = vpop.permute.xlu1 %1178 }
  0xd9   : > { %v1181_v2 = vunpack.i.h.bf16 %v1179_v0  ;;  %v1180_v3 = vunpack.i.l.bf16 %v1179_v0 }
  0xda   : > { %v299_v50 = vsel %vm297_vm5, %v1150_v47, %v1151_v46  ;;  %v1009_v58 = vpack.c.bf16 %v1150_v47, %v1145_v41 }
  0xdb   : > { %v307_v54 = vpack.c.bf16 %v299_v50, %v298_v49  ;;  %v1164_v57 = vpop.permute.xlu0 %1163  ;;  %v370_v20 = vsel %vm2030_vm10, %v1180_v3, %v1181_v2 }
  0xdc   : > { %v1166_v59 = vunpack.i.h.bf16 %v1164_v57  ;;  %v1165_v60 = vunpack.i.l.bf16 %v1164_v57  ;;  %v1189_v22 = vpop.permute.xlu1 %1188 }
  0xdd   : > { %509 = vmatprep.subr.bf16.mxu0 %v307_v54  ;;  %v1191_v27 = vunpack.i.h.bf16 %v1189_v22  ;;  %v1190_v28 = vunpack.i.l.bf16 %v1189_v22 }
  0xde   : > { %1010 = vmatpush1.bf16.msk.msra.mxu0 %vm2037_vm8, %v1009_v58  ;;  %v348_v1 = vsel %vm2034_vm7, %v1165_v60, %v1166_v59  ;;  %v1019_v25 = vpack.c.bf16 %v1170_v56, %v1165_v60 }
  0xdf   : > { %511 = vmatprep.subr.bf16.mxu0 %v332_v62  ;;  %v1174_v4 = vpop.permute.xlu0 %1173  ;;  %v357_v15 = vpack.c.bf16 %v349_v63, %v348_v1 }
  0xe0   : > { %v1176_v17 = vunpack.i.h.bf16 %v1174_v4  ;;  %v1175_v18 = vunpack.i.l.bf16 %v1174_v4  ;;  %v1199_v35 = vpop.permute.xlu1 %1198 }
  0xe1   : > { %v1201_v42 = vunpack.i.h.bf16 %v1199_v35  ;;  %v1200_v43 = vunpack.i.l.bf16 %v1199_v35 }
  0xe2   : > { %1015 = vmatpush1.bf16.msk.msra.mxu0 %vm2036_vm11, %v1014_v16  ;;  %v369_v21 = vsel %vm2030_vm10, %v1175_v18, %v1176_v17  ;;  %vm2033_vm10 = vcmask 1039360   ;;  %v1024_v37 = vpack.c.bf16 %v1180_v3, %v1175_v18  ;;  %vm464_vm11 = vcmask 908288   ;;  %v1312_v18 = vld [vmem:[%s2023_s1] ss:$8 sps:$4 sm:$0xff]  }
  0xe3   : > { %513 = vmatprep.subr.bf16.mxu0 %v357_v15  ;;  %v378_v23 = vpack.c.bf16 %v370_v20, %v369_v21  ;;  %v1184_v24 = vpop.permute.xlu0 %1183  ;;  %v403_v40 = vsel %vm2033_vm10, %v1190_v28, %v1191_v27  ;;  %vm1846_vm8 = vmpackc.low %vm464_vm11, %vm464_vm11 }
  0xe4   : > { %v1186_v31 = vunpack.i.h.bf16 %v1184_v24  ;;  %v1185_v34 = vunpack.i.l.bf16 %v1184_v24  ;;  %v1209_v41 = vpop.permute.xlu1 %1208 }
  0xe5   : > { %v1211_v50 = vunpack.i.h.bf16 %v1209_v41  ;;  %v1210_v51 = vunpack.i.l.bf16 %v1209_v41 }
  0xe6   : > { %1020 = vmatpush1.bf16.msk.msra.mxu0 %vm2031_vm13, %v1019_v25  ;;  %v1027_v38 = vpack.c.bf16 %v1191_v27, %v1186_v31  ;;  %v402_v39 = vsel %vm2033_vm10, %v1185_v34, %v1186_v31  ;;  %vm1813_vm13 = vmpackc.low %vm2033_vm10, %vm2033_vm10  ;;  %vm443_vm10 = vcmask 916480  }
  0xe7   : > { %515 = vmatprep.subr.bf16.mxu0 %v378_v23  ;;  %v1194_v36 = vpop.permute.xlu0 %1193  ;;  %v410_v49 = vpack.c.bf16 %v403_v40, %v402_v39  ;;  %v445_v59 = vsel %vm443_vm10, %v1210_v51, %v1211_v50 }
  0xe8   : > { %v1196_v44 = vunpack.i.h.bf16 %v1194_v36  ;;  %v1195_v45 = vunpack.i.l.bf16 %v1194_v36  ;;  %v1219_v5 = vpop.permute.xlu1 %1218 }
  0xe9   : > { %v1221_v60 = vunpack.i.h.bf16 %v1219_v5  ;;  %v1220_v62 = vunpack.i.l.bf16 %v1219_v5 }
  0xea   : > { %1025 = vmatpush1.bf16.msk.msra.mxu0 %vm2032_vm15, %v1024_v37  ;;  %vm2035_vm15 = vcmask 924672   ;;  %v1030_v53 = vpack.c.bf16 %v1201_v42, %v1196_v44 }
  0xeb   : > { %517 = vmatprep.subr.bf16.mxu0 %v992_v29  ;;  %v1204_v46 = vpop.permute.xlu0 %1203  ;;  %v423_v54 = vsel %vm2035_vm15, %v1195_v45, %v1196_v44  ;;  %v424_v55 = vsel %vm2035_vm15, %v1200_v43, %v1201_v42  ;;  %vm1826_vm7 = vmpackc.low %vm2035_vm15, %vm2035_vm15  ;;  %v466_v15 = vsel %vm464_vm11, %v1220_v62, %v1221_v60 }
  0xec   : > { %v1206_v29 = vunpack.i.h.bf16 %v1204_v46  ;;  %v1205_v52 = vunpack.i.l.bf16 %v1204_v46  ;;  %v431_v57 = vpack.c.bf16 %v424_v55, %v423_v54  ;;  %vm1836_vm15 = vmpackc.low %vm443_vm10, %vm443_vm10 }
  0xee   : > { %518 = vmatpush1.bf16.msra.mxu0 %v991_v30  ;;  %v1033_v30 = vpack.c.bf16 %v1211_v50, %v1206_v29  ;;  %v444_v58 = vsel %vm443_vm10, %v1205_v52, %v1206_v29 }
  0xef   : > { %1028 = vmatprep.subr.msk.bf16.mxu0 %vm1813_vm13, %v1027_v38  ;;  %v1214_v7 = vpop.permute.xlu0 %1213  ;;  %v452_v2 = vpack.c.bf16 %v445_v59, %v444_v58  ;;  %v1463_v58 = vmov 3  }
  0xf0   : > { %v1216_v63 = vunpack.i.h.bf16 %v1214_v7  ;;  %v1215_v0 = vunpack.i.l.bf16 %v1214_v7 }
  0xf2   : > { %520 = vmatpush1.bf16.msra.mxu0 %v410_v49  ;;  %v1036_v3 = vpack.c.bf16 %v1221_v60, %v1216_v63  ;;  %v465_v4 = vsel %vm464_vm11, %v1215_v0, %v1216_v63 }
  0xf3   : > { %1031 = vmatprep.subr.msk.bf16.mxu0 %vm1826_vm7, %v1030_v53  ;;  %v473_v17 = vpack.c.bf16 %v466_v15, %v465_v4 }
  0xf6   : > { %522 = vmatpush1.bf16.msra.mxu0 %v431_v57 }
  0xf7   : > { %1034 = vmatprep.subr.msk.bf16.mxu0 %vm1836_vm15, %v1033_v30 }
  0xf9   : > { %v562_v20 = vpop.permute.xlu1 %561 }
  0xfa   : > { %524 = vmatpush1.bf16.msra.mxu0 %v452_v2 }
  0xfb   : > { %1037 = vmatprep.subr.msk.bf16.mxu0 %vm1846_vm8, %v1036_v3 }
  0xfe   : > { %526 = vmatpush1.bf16.msra.mxu0 %v473_v17  ;;  %v570_v23 = vpop.permute.xlu1 %569 }
 0x100   : > { %v557_v21 = vpop.permute.xlu0 %556 }
 0x101   : > { %542 = vmatmul.mubr.bf16.vlgmr.msra.gmra.mrb[0].mxu0 %v1312_v18 }
 0x105   : > { %v574_v31 = vpop.permute.xlu0 %573 }
 0x1d4   : > { %v543_v22 = vpop.f32.mrb[0].mxu0 }
 0x1d5   : > { %v564_v24 = vmul.f32 %v557_v21, %v543_v22  ;;  %v545_v25 = vpop.f32.mrb[1].mxu0 }
 0x1d6   : > { %v565_v27 = vmul.f32 %v557_v21, %v545_v25  ;;  %v547_v28 = vpop.f32.mrb[2].mxu0 }
 0x1d7   : > { %v576_v34 = vadd.f32 %v570_v23, %v564_v24  ;;  %v566_v35 = vmul.f32 %v562_v20, %v547_v28  ;;  %v549_v36 = vpop.f32.mrb[3].mxu0 }
 0x1d8   : > { %v577_v37 = vadd.f32 %v570_v23, %v565_v27  ;;  %v567_v38 = vmul.f32 %v562_v20, %v549_v36 }
 0x1d9   : > { %v1855_v39 = vmax.f32 %v576_v34, 0.0  ;;  %v578_v40 = vadd.f32 %v574_v31, %v566_v35 }
 0x1da   : > { %v1857_v41 = vmax.f32 %v577_v37, 0.0  ;;  %v579_v42 = vadd.f32 %v574_v31, %v567_v38 }
 0x1db   : > { %v1859_v43 = vmax.f32 %v578_v40, 0.0  ;;  %v584_v44 = vsel %vm1650_vm0, %v1855_v39, 0.0  ;;  %v588_v45 = vsel %vm1672_vm2, %v1855_v39, 0.0 }
 0x1dc   : > { %v1867_v46 = vmax.f32 %v579_v42, 0.0  ;;  %v1226_v49 = vpack.i.bf16 %v1857_v41, %v1855_v39  ;;  %v585_v50 = vsel %vm1662_vm1, %v1857_v41, 0.0  ;;  %v589_v51 = vsel %vm1676_vm3, %v1857_v41, 0.0 }
 0x1dd   : > { %v1231_v29 = vpack.i.bf16 %v585_v50, %v584_v44  ;;  %v1246_v52 = vpack.i.bf16 %v589_v51, %v588_v45  ;;  %v586_v53 = vsel %vm1650_vm0, %v1859_v43, 0.0  ;;  %v590_v54 = vsel %vm1672_vm2, %v1859_v43, 0.0  ;;  %vm2073_vm0 = vmpackc.low %vm1747_vm6, %vm1747_vm6 }
 0x1de   : > { %1227 = vrot.lane.b32.xlu0 %v1226_v49, %s1452_s21  ;;  %v587_v55 = vsel %vm1662_vm1, %v1867_v46, 0.0  ;;  %v1241_v5 = vpack.i.bf16 %v1867_v46, %v1859_v43  ;;  %v591_v7 = vsel %vm1676_vm3, %v1867_v46, 0.0  ;;  %v685_v6 = vpack.c.bf16 %v1867_v46, %v1857_v41  ;;  %vm2074_vm1 = vmpackc.low %vm1759_vm9, %vm1759_vm9 }
 0x1df   : > { %1232 = vrot.lane.b32.xlu1 %v1231_v29, %s1453_s23  ;;  %v1236_v13 = vpack.i.bf16 %v587_v55, %v586_v53  ;;  %v1256_v30 = vpack.i.bf16 %v591_v7, %v590_v54  ;;  %v684_v57 = vpack.c.bf16 %v1859_v43, %v1855_v39  ;;  %vm2075_vm2 = vcmask 121856   ;;  %vm2080_vm9 = vmpackc.low %vm1789_vm14, %vm1789_vm14 }
 0x1e0   : > { %vm2076_vm3 = vmmov %vm2075_vm2 }
 0x1e2   : > { %1247 = vrot.lane.b32.xlu0 %v1246_v52, %s1454_s12 }
 0x1e3   : > { %1237 = vrot.lane.b32.xlu1 %v1236_v13, %s1453_s23  ;;  %s990_s23 = sshll.u32 %s1636_s11, 5 }
 0x1e6   : > { %1252 = vrot.lane.b32.xlu0 %v1231_v29, %s1455_s13 }
 0x1e7   : > { %1242 = vrot.lane.b32.xlu1 %v1241_v5, %s1452_s21 }
 0x1ea   : > { %1267 = vrot.lane.b32.xlu0 %v1246_v52, %s1456_s9 }
 0x1eb   : > { %1257 = vrot.lane.b32.xlu1 %v1256_v30, %s1454_s12  ;;  %s230_s12 = scalar_lea.vmem [#allocation8], %s990_s23 }
 0x1ee   : > { %1272 = vrot.lane.b32.xlu0 %v1231_v29, %s1457_s28 }
 0x1ef   : > { %1262 = vrot.lane.b32.xlu1 %v1236_v13, %s1455_s13  ;;  %s897_s13 = sshll.u32 %s230_s12, 4  ;;  %s1972_s13 = int_to_ptr.vmem [resolvable:$true] %s897_s13 }
 0x1f0   : > { %s1376_s7 = scalar_lea.vmem %s1972_s13, 512  ;;  %p1383_p10 = scmp.lt.s32.totalorder %s1972_s13, %s1381_s8 }
 0x1f1   : > { %p1377_p4 = scmp.ne.s32.totalorder %s1972_s13, %s1376_s7  ;;  %p1384_p13 = scmp.lt.s32.totalorder %s1382_s25, %s1376_s7 }
 0x1f2   : > { %1277 = vrot.lane.b32.xlu0 %v1226_v49, %s1458_s29 }
 0x1f3   : > { %1282 = vrot.lane.b32.xlu1 %v1256_v30, %s1456_s9  ;;  %s1005_s9 = sshll.u32 %s1512_s19, 9  ;;  %s884_s19 = scalar_lea.sflag [#allocation5], %s1636_s11 }
 0x1f4   : > { %p1378_p6 = pnand %p1377_p4, %p1585_p12  ;;  %p1385_p3 = por %p1384_p13, %p1383_p10 }
 0x1f6   : > { %1297 = vrot.lane.b32.xlu0 %v1246_v52, %s1459_s10  ;;  %p1379_p8 = pneg %p1378_p6 }
 0x1f7   : > { %1287 = vrot.lane.b32.xlu1 %v1236_v13, %s1457_s28 }
 0x1f8   : > { %p1386_p7 = pnand %p1385_p3, %p1379_p8 }
 0x1fa   : > { %847 = vperm.xlu0 %1306, %v1740_v33  }
 0x1fb   : > { %1292 = vrot.lane.b32.xlu1 %v1241_v5, %s1458_s29 }
 0x1fe   : > { %1309 = vset.pattern.permute.xlu0 %v1463_v58 }
 0x1ff   : > { %1302 = vrot.lane.b32.xlu1 %v1256_v30, %s1459_s10  ;;  %864 = vperm.xlu0 %1309, %v1735_v32   ;;  %s1977_s10 = scalar_lea.hbm %s2026_s4, %s1005_s9 }
 0x203   : > { %852 = vperm.xlu1 %1307, %v1735_v32  }
 0x207   : > { %1308 = vset.pattern.permute.xlu1 %v1463_v58 }
 0x208   : > { %860 = vperm.xlu1 %1308, %v1740_v33  }
 0x250   : > { %v1228_v59 = vpop.permute.xlu0 %1227 }
 0x251   : > { %v1233_v60 = vpop.permute.xlu1 %1232  ;;  %v1230_v15 = vunpack.i.h.bf16 %v1228_v59  ;;  %v1229_v17 = vunpack.i.l.bf16 %v1228_v59 }
 0x252   : > { %v1235_v62 = vunpack.i.h.bf16 %v1233_v60  ;;  %v1234_v63 = vunpack.i.l.bf16 %v1233_v60 }
 0x253   : > { %v628_v28 = vsel %vm322_vm4, %v1229_v17, %v1230_v15 }
 0x254   : > { %v1248_v0 = vpop.permute.xlu0 %1247  ;;  %v604_v18 = vsel %vm297_vm5, %v1234_v63, %v1235_v62 }
 0x255   : > { %v1238_v2 = vpop.permute.xlu1 %1237  ;;  %v1250_v25 = vunpack.i.h.bf16 %v1248_v0  ;;  %v1249_v27 = vunpack.i.l.bf16 %v1248_v0 }
 0x256   : > { %v1240_v3 = vunpack.i.h.bf16 %v1238_v2  ;;  %v1239_v4 = vunpack.i.l.bf16 %v1238_v2 }
 0x257   : > { %v652_v48 = vsel %vm2075_vm2, %v1249_v27, %v1250_v25 }
 0x258   : > { %v605_v20 = vsel %vm297_vm5, %v1239_v4, %v1240_v3  ;;  %v1041_v32 = vpack.c.bf16 %v1239_v4, %v1234_v63  ;;  %v1253_v23 = vpop.permute.xlu0 %1252  ;;  %vm2078_vm5 = vcmask 7168  }
 0x259   : > { %v1243_v21 = vpop.permute.xlu1 %1242  ;;  %v613_v22 = vpack.c.bf16 %v605_v20, %v604_v18  ;;  %v1255_v40 = vunpack.i.h.bf16 %v1253_v23  ;;  %v1254_v42 = vunpack.i.l.bf16 %v1253_v23  ;;  %vm2079_vm6 = vmmov %vm2078_vm5 }
 0x25a   : > { %v1245_v24 = vunpack.i.h.bf16 %v1243_v21  ;;  %v1244_v33 = vunpack.i.l.bf16 %v1243_v21 }
 0x25b   : > { %800 = vmatprep.subr.bf16.mxu1 %v613_v22  ;;  %v672_v61 = vsel %vm2078_vm5, %v1254_v42, %v1255_v40 }
 0x25c   : > { %1042 = vmatpush1.bf16.msk.msra.mxu1 %vm2073_vm0, %v1041_v32  ;;  %v629_v31 = vsel %vm322_vm4, %v1244_v33, %v1245_v24  ;;  %v1046_v36 = vpack.c.bf16 %v1244_v33, %v1229_v17  ;;  %v1268_v44 = vpop.permute.xlu0 %1267  ;;  %vm2077_vm4 = vmpackc.low %vm1774_vm12, %vm1774_vm12  ;;  %vm2081_vm12 = vcmask 1039360   ;;  %vm2083_vm0 = vcmask 924672  }
 0x25d   : > { %v1258_v34 = vpop.permute.xlu1 %1257  ;;  %v637_v35 = vpack.c.bf16 %v629_v31, %v628_v28  ;;  %v1270_v19 = vunpack.i.h.bf16 %v1268_v44  ;;  %v1269_v10 = vunpack.i.l.bf16 %v1268_v44  ;;  %vm2082_vm14 = vmmov %vm2081_vm12 }
 0x25e   : > { %v1260_v37 = vunpack.i.h.bf16 %v1258_v34  ;;  %v1259_v38 = vunpack.i.l.bf16 %v1258_v34  ;;  %v1315_v34 = vld [vmem:[#allocation6] ss:$8 sps:$4 sm:$0xff]  }
 0x25f   : > { %802 = vmatprep.subr.bf16.mxu1 %v637_v35  ;;  %v696_v3 = vsel %vm2082_vm14, %v1269_v10, %v1270_v19 }
 0x260   : > { %1047 = vmatpush1.bf16.msk.msra.mxu1 %vm2074_vm1, %v1046_v36  ;;  %v653_v45 = vsel %vm2076_vm3, %v1259_v38, %v1260_v37  ;;  %v1051_v51 = vpack.c.bf16 %v1259_v38, %v1249_v27  ;;  %v1273_v5 = vpop.permute.xlu0 %1272  ;;  %vm2084_vm1 = vmmov %vm2083_vm0 }
 0x261   : > { %v1263_v49 = vpop.permute.xlu1 %1262  ;;  %v661_v50 = vpack.c.bf16 %v653_v45, %v652_v48  ;;  %v1275_v26 = vunpack.i.h.bf16 %v1273_v5  ;;  %v1274_v0 = vunpack.i.l.bf16 %v1273_v5 }
 0x262   : > { %v1265_v29 = vunpack.i.h.bf16 %v1263_v49  ;;  %v1264_v52 = vunpack.i.l.bf16 %v1263_v49 }
 0x263   : > { %804 = vmatprep.subr.bf16.mxu1 %v661_v50  ;;  %v716_v39 = vsel %vm2084_vm1, %v1274_v0, %v1275_v26 }
 0x264   : > { %1052 = vmatpush1.bf16.msk.msra.mxu1 %vm2077_vm4, %v1051_v51  ;;  %v673_v53 = vsel %vm2079_vm6, %v1264_v52, %v1265_v29  ;;  %v1056_v7 = vpack.c.bf16 %v1264_v52, %v1254_v42  ;;  %v1278_v63 = vpop.permute.xlu0 %1277 }
 0x265   : > { %v1283_v54 = vpop.permute.xlu1 %1282  ;;  %v681_v55 = vpack.c.bf16 %v673_v53, %v672_v61  ;;  %v1280_v17 = vunpack.i.h.bf16 %v1278_v63  ;;  %v1279_v18 = vunpack.i.l.bf16 %v1278_v63 }
 0x266   : > { %v1285_v13 = vunpack.i.h.bf16 %v1283_v54  ;;  %v1284_v30 = vunpack.i.l.bf16 %v1283_v54 }
 0x267   : > { %806 = vmatprep.subr.bf16.mxu1 %v681_v55  ;;  %v736_v33 = vsel %vm443_vm10, %v1279_v18, %v1280_v17 }
 0x268   : > { %1057 = vmatpush1.bf16.msk.msra.mxu1 %vm2080_vm9, %v1056_v7  ;;  %v1059_v58 = vpack.c.bf16 %v1285_v13, %v1270_v19  ;;  %v697_v62 = vsel %vm2081_vm12, %v1284_v30, %v1285_v13  ;;  %v1298_v43 = vpop.permute.xlu0 %1297 }
 0x269   : > { %v1288_v14 = vpop.permute.xlu1 %1287  ;;  %808 = vmatprep.subr.bf16.mxu1 %v685_v6  ;;  %v704_v41 = vpack.c.bf16 %v697_v62, %v696_v3  ;;  %v1300_v23 = vunpack.i.h.bf16 %v1298_v43  ;;  %v1299_v24 = vunpack.i.l.bf16 %v1298_v43 }
 0x26a   : > { %v1290_v59 = vunpack.i.h.bf16 %v1288_v14  ;;  %v1289_v60 = vunpack.i.l.bf16 %v1288_v14 }
 0x26b   : > { %v756_v28 = vsel %vm464_vm11, %v1299_v24, %v1300_v23 }
 0x26c   : > { %809 = vmatpush1.bf16.msra.mxu1 %v684_v57  ;;  %v1062_v46 = vpack.c.bf16 %v1290_v59, %v1275_v26  ;;  %v717_v15 = vsel %vm2083_vm0, %v1289_v60, %v1290_v59 }
 0x26d   : > { %v1293_v2 = vpop.permute.xlu1 %1292  ;;  %1060 = vmatprep.subr.msk.bf16.mxu1 %vm1813_vm13, %v1059_v58  ;;  %v724_v47 = vpack.c.bf16 %v717_v15, %v716_v39 }
 0x26e   : > { %v1295_v6 = vunpack.i.h.bf16 %v1293_v2  ;;  %v1294_v4 = vunpack.i.l.bf16 %v1293_v2 }
 0x270   : > { %811 = vmatpush1.bf16.msra.mxu1 %v704_v41  ;;  %v1065_v57 = vpack.c.bf16 %v1295_v6, %v1280_v17  ;;  %v737_v32 = vsel %vm443_vm10, %v1294_v4, %v1295_v6 }
 0x271   : > { %v1303_v20 = vpop.permute.xlu1 %1302  ;;  %1063 = vmatprep.subr.msk.bf16.mxu1 %vm1826_vm7, %v1062_v46  ;;  %v744_v25 = vpack.c.bf16 %v737_v32, %v736_v33 }
 0x272   : > { %v1305_v21 = vunpack.i.h.bf16 %v1303_v20  ;;  %v1304_v22 = vunpack.i.l.bf16 %v1303_v20 }
 0x274   : > { %813 = vmatpush1.bf16.msra.mxu1 %v724_v47  ;;  %v1068_v56 = vpack.c.bf16 %v1305_v21, %v1300_v23  ;;  %v757_v27 = vsel %vm464_vm11, %v1304_v22, %v1305_v21 }
 0x275   : > { %1066 = vmatprep.subr.msk.bf16.mxu1 %vm1836_vm15, %v1065_v57  ;;  %v764_v31 = vpack.c.bf16 %v757_v27, %v756_v28 }
 0x278   : > { %815 = vmatpush1.bf16.msra.mxu1 %v744_v25 }
 0x279   : > { %1069 = vmatprep.subr.msk.bf16.mxu1 %vm1846_vm8, %v1068_v56  ;;  %v848_v1 = vpop.permute.xlu0 %847 }
 0x27c   : > { %817 = vmatpush1.bf16.msra.mxu1 %v764_v31 }
 0x27e   : > { %v865_v48 = vpop.permute.xlu0 %864 }
 0x27f   : > { %833 = vmatmul.mubr.bf16.vlgmr.msra.gmra.mrb[0].mxu1 %v1315_v34 }
 0x282   : > { %v853_v35 = vpop.permute.xlu1 %852 }
 0x287   : > { %v861_v37 = vpop.permute.xlu1 %860 }
 0x352   : > { %v834_v36 = vpop.f32.mrb[0].mxu1 }
 0x353   : > { %v855_v38 = vmul.f32 %v848_v1, %v834_v36  ;;  %v836_v40 = vpop.f32.mrb[1].mxu1 }
 0x354   : > { %v856_v42 = vmul.f32 %v848_v1, %v836_v40  ;;  %v838_v44 = vpop.f32.mrb[2].mxu1 }
 0x355   : > { %v867_v45 = vadd.f32 %v861_v37, %v855_v38  ;;  %v857_v16 = vmul.f32 %v853_v35, %v838_v44  ;;  %v840_v49 = vpop.f32.mrb[3].mxu1 }
 0x356   : > { %v868_v50 = vadd.f32 %v861_v37, %v856_v42  ;;  %v858_v51 = vmul.f32 %v853_v35, %v840_v49 }
 0x357   : > { %v871_v29 = vadd.f32 %v867_v45, %v1657_v8  ;;  %v869_v52 = vadd.f32 %v865_v48, %v857_v16 }
 0x358   : > { %v872_v61 = vadd.f32 %v868_v50, %v1660_v9  ;;  %v870_v53 = vadd.f32 %v865_v48, %v858_v51 }
 0x359   : > { %v875_v54 = vmax.f32 %v871_v29, 0.0  ;;  %v873_v55 = vadd.f32 %v869_v52, %v1667_v11 }
 0x35a   : > { %v876_v5 = vmax.f32 %v872_v61, 0.0  ;;  %v874_v7 = vadd.f32 %v870_v53, %v1670_v12 }
 0x35b   : > { %879 = vst [vmem:[%s230_s12] sm:$0xff] %v875_v54  ;;  %v877_v8 = vmax.f32 %v873_v55, 0.0 }
 0x35c   : > { %880 = vst [vmem:[%s230_s12 + $0x8] sm:$0xff] %v876_v5  ;;  %v878_v13 = vmax.f32 %v874_v7, 0.0 }
 0x35d   : > { %881 = vst [vmem:[%s230_s12 + $0x10] sm:$0xff] %v877_v8 }
 0x35e   : > { %882 = vst [vmem:[%s230_s12 + $0x18] sm:$0xff] %v878_v13 }
 0x35f   : > { %1389 = shalt.err (!%p1386_p7)
}
 0x360   : > { %s1390_s14 = scalar_lea.hbm %s1977_s10, 512  ;;  %s1394_s6 = scalar_lea.hbm %s2026_s4, 1024 }
 0x361   : > { %p1391_p9 = scmp.ne.s32.totalorder %s1977_s10, %s1390_s14  ;;  %p1395_p5 = scmp.lt.u32.totalorder %s1977_s10, %s2026_s4 }
 0x362   : > { %p1396_p2 = scmp.lt.u32.totalorder %s1394_s6, %s1390_s14  ;;  %p1398_p4 = scmp.lt.u32.totalorder %s1390_s14, %s1977_s10 }
 0x363   : > { %p1392_p1 = pnand %p1391_p9, %p1585_p12 }
 0x364   : > { %p1397_p11 = por %p1396_p2, %p1395_p5 }
 0x365   : > { %p1393_p0 = pneg %p1392_p1 }
 0x366   : > { %p1399_p6 = por %p1398_p4, %p1397_p11 }
 0x368   : > { %p1400_p8 = pnand %p1399_p6, %p1393_p0 }
 0x36a   : > { %1403 = shalt.err (!%p1400_p8)
}
 0x36b   : > { %s1465_s9 = smov 256  }
 0x36c   : > { %1076 = dma.vmem_to_hbm [thread:$0]  (%p1585_p12), %s1972_s13, 512, %s1977_s10, %s884_s19, %s1465_s9, %s1465_s9, %s1452_s21  }
 0x36d PF: > { %s912_s28 = sand.u32 1, %s1434_s15   ;;  %p2085_p10 = scmp.ne.s32.totalorder %s2039_s22, 0 }
 0x36e   : > { %p2086_p13 = scmp.ge.s32.totalorder %s1446_s18, 2  ;;  %s913_s29 = scalar_lea.sflag [#allocation5], %s912_s28 }
 0x370   : > { %p1087_p3 = pnand %p2086_p13, %p2085_p10 }
 0x372   : > { %1429 = dma.done.wait (!%p1087_p3), %s913_s29, 512  }
 0x373   : > { %1431 = vsyncadd (!%p1087_p3), %s913_s29, 4294966784  ;;  %p18_p7 = scmp.ge.s32.totalorder %s1547_s27, 4   ;;  %s2087_s15 = smov %s1438_s16 }
 0x374   : > { %s2088_s16 = smov %s1442_s17  ;;  %s2089_s17 = smov %s1581_s24 }
 0x375   : > { %s2090_s18 = smov %s1547_s27  ;;  %20 = sbr.rel (!%p18_p7) target bundleno = 6 (0x6), region = 85 }
 0x37c   :  { %918 = vsyncpa [#allocation4], 1 }
 0x37d   :  { %920 = vsyncpa [#allocation4 + $0x1], 1 }
 0x37e   :  { %921 = vsyncpa [#allocation7], 1 }
 0x37f   :  { %922 = vsyncpa [#allocation5], 1 }
 0x380   :  { %924 = vsyncpa [#allocation5 + $0x1], 1 }

</bundles_post_ra>
